<compile_context>
chip_gen: v6e
topology: v6e:2x2x1
jax: 0.10.0
libtpu: 0.0.40
codegen_flags: <defaults>
</compile_context>

<pallas_src>
import functools

import numpy as np
import jax
import jax.numpy as jnp
from jax.experimental import pallas as pl
from jax.experimental.pallas import tpu as pltpu


def _round_up(x, m):
    return ((x + m - 1) // m) * m


# --------------------------------------------------------------------------
# Kernel 1: rel_val = rel_features @ W^T + b  (over unique relations; tiny)
# --------------------------------------------------------------------------
def _linear_kernel(x_ref, w_ref, b_ref, o_ref):
    o_ref[...] = (
        jnp.dot(x_ref[...], w_ref[...], preferred_element_type=jnp.float32)
        + b_ref[...]
    ).astype(o_ref.dtype)


# --------------------------------------------------------------------------
# Kernel 2: out = relu(scat @ fact_val), bf16 x bf16 -> f32, reduced over k.
# Accumulates directly into the resident f32 output block (no scratch).
# --------------------------------------------------------------------------
def _agg_kernel(scat_ref, fv_ref, o_ref, *, tf, fv_resident):
    k = pl.program_id(1)

    @pl.when(k == 0)
    def _():
        o_ref[...] = jnp.zeros_like(o_ref)

    if fv_resident:
        # fact_val is fully resident in VMEM; slice the current fact tile.
        off = pl.multiple_of(k * tf, tf)
        fv = fv_ref[pl.ds(off, tf), :]
    else:
        fv = fv_ref[...]

    # bf16 x bf16 -> f32 (single-pass MXU); accumulate in f32 output block.
    o_ref[...] += jnp.dot(scat_ref[...], fv, preferred_element_type=jnp.float32)

    @pl.when(k == pl.num_programs(1) - 1)
    def _():
        o_ref[...] = jnp.maximum(o_ref[...], 0.0)


# --------------------------------------------------------------------------
# Wrapper
# --------------------------------------------------------------------------
def type_layer_forward(local_entity, edge_list, rel_features, weight, bias):
    """Matches TypeLayer.forward.

    local_entity : (batch, max_local_entity)   -- used only for shape
    edge_list    : (batch_heads, batch_rels, batch_tails, batch_ids,
                    fact_ids, weight_list)  python/numpy int lists;
                    heads/tails are global entity indices in [0, batch*MLE)
    rel_features : (num_relations, in_features) float32
    weight       : (out_features, in_features)  (nn.Linear layout)
    bias         : (out_features,)
    """
    batch_heads, batch_rels, batch_tails, batch_ids, fact_ids, _wl = edge_list
    batch_size, max_local_entity = local_entity.shape
    num_fact = len(fact_ids)
    E = batch_size * max_local_entity
    num_rel, in_features = rel_features.shape
    out_features = weight.shape[0]
    # The original module does .view(batch, MLE, in_features); only valid when
    # out == in.  Derive the reshape size from out_features.
    assert in_features == out_features, "TypeLayer's .view assumes in == out"
    hidden_size = out_features

    # ---- generation-specific tile / VMEM budgets ----------------------------
    try:
        kind = jax.devices()[0].device_kind.lower()
    except Exception:  # pragma: no cover - defensive
        kind = ""
    is_v7 = ("v7" in kind) or ("7x" in kind)
    te_max, tf_max = (1024, 2048) if is_v7 else (2048, 4096)
    # Cap below physical VMEM with headroom: 64 MiB/TC on v7x, 128 MiB on v5e/v6e.
    vmem_cap = (56 if is_v7 else 100) * 1024 * 1024

    # ---- padded, lane/sublane-aligned sizes ---------------------------------
    IN_P = _round_up(in_features, 128)
    OUT_P = _round_up(out_features, 128)
    R_P = _round_up(num_rel, 16)            # bf16 output -> 16-row packing
    F_P0 = _round_up(num_fact, 128)

    TE = min(te_max, _round_up(E, 16))      # entity tile (sublane axis of scat)
    TF = min(tf_max, F_P0)                  # fact tile   (lane axis of scat)

    # Keep fact_val fully VMEM-resident in kernel 2 when it is small enough.
    fv_resident = F_P0 * OUT_P * 2 <= (12 << 20)

    def _vmem_need(te, tf, f_p):
        n = 2 * te * tf * 2                                       # scat (bf16, dbl-buf)
        n += (f_p * OUT_P * 2) if fv_resident else (2 * tf * OUT_P * 2)  # fact_val
        n += 2 * te * OUT_P * 4                                   # out tile (f32)
        return n

    # Shrink tiles until the double-buffered working set fits the budget.
    while _vmem_need(TE, TF, _round_up(F_P0, TF)) + (8 << 20) > vmem_cap and TF > 512:
        TF = max(128, (TF // 2) // 128 * 128)
    while _vmem_need(TE, TF, _round_up(F_P0, TF)) + (8 << 20) > vmem_cap and TE > 256:
        TE = max(256, (TE // 2) // 16 * 16)

    E_P = _round_up(E, TE)
    F_P = _round_up(F_P0, TF)
    vmem_limit = int(min(vmem_cap,
                         max(_vmem_need(TE, TF, F_P) + (8 << 20), 32 << 20)))

    # ---- Pallas #1: rel_val = rel_features @ W^T + b over unique relations --
    if R_P <= 1024:
        TR = R_P
    else:
        TR = 512
        R_P = _round_up(R_P, TR)

    rel_p = jnp.zeros((R_P, IN_P), jnp.float32)
    rel_p = rel_p.at[:num_rel, :in_features].set(rel_features.astype(jnp.float32))
    w_t_p = jnp.zeros((IN_P, OUT_P), jnp.float32)
    w_t_p = w_t_p.at[:in_features, :out_features].set(
        weight.astype(jnp.float32).T)
    b_p = jnp.zeros((1, OUT_P), jnp.float32)
    b_p = b_p.at[0, :out_features].set(bias.astype(jnp.float32))

    rel_val = pl.pallas_call(
        _linear_kernel,
        out_shape=jax.ShapeDtypeStruct((R_P, OUT_P), jnp.bfloat16),
        grid=(R_P // TR,),
        in_specs=[
            pl.BlockSpec((TR, IN_P), lambda i: (i, 0)),
            pl.BlockSpec((IN_P, OUT_P), lambda i: (0, 0)),
            pl.BlockSpec((1, OUT_P), lambda i: (0, 0)),
        ],
        out_specs=pl.BlockSpec((TR, OUT_P), lambda i: (i, 0)),
        compiler_params=pltpu.CompilerParams(dimension_semantics=("parallel",)),
        cost_estimate=pl.CostEstimate(
            flops=2 * R_P * IN_P * OUT_P,
            transcendentals=0,
            bytes_accessed=4 * (R_P * IN_P + IN_P * OUT_P) + 2 * R_P * OUT_P,
        ),
    )(rel_p, w_t_p, b_p)

    # ---- glue: gather per-fact rows of rel_val (index_select), pad ----------
    rels = jnp.asarray(np.asarray(batch_rels), dtype=jnp.int32)
    fact_val = jnp.zeros((F_P, OUT_P), jnp.bfloat16)
    fact_val = fact_val.at[:num_fact].set(rel_val[rels])   # padded rows = 0

    # ---- glue: dense scatter matrix = fact2tail_mat + fact2head_mat ---------
    # The module uses val_one (all 1.0), so weight_list is intentionally
    # ignored.  Values {0,1,2} are exact in bf16 -> halve HBM bytes of the
    # dominant stream; built directly in bf16 (no f32 detour).
    fact_idx = jnp.asarray(np.asarray(fact_ids), dtype=jnp.int32)
    tails = jnp.asarray(np.asarray(batch_tails), dtype=jnp.int32)
    heads = jnp.asarray(np.asarray(batch_heads), dtype=jnp.int32)
    scat = jnp.zeros((E_P, F_P), jnp.bfloat16)
    scat = scat.at[tails, fact_idx].add(1.0)
    scat = scat.at[heads, fact_idx].add(1.0)
    # TODO(synk): at production fact counts the dense (E_P, F_P) scat is >99%
    # zero; replace with a PrefetchScalarGridSpec block-sparse index_map (visit
    # only non-empty fact tiles per entity tile) or a gather-accumulate
    # formulation (each fact touches <= 2 entity rows) for an order-of-
    # magnitude HBM / FLOP win.

    # ---- Pallas #2: out = relu(scat @ fact_val), (E, F)-tiled reduction -----
    if fv_resident:
        fv_spec = pl.BlockSpec((F_P, OUT_P), lambda i, k: (0, 0))
        fv_hbm_bytes = F_P * OUT_P * 2
    else:
        fv_spec = pl.BlockSpec((TF, OUT_P), lambda i, k: (k, 0))
        fv_hbm_bytes = (E_P // TE) * F_P * OUT_P * 2

    agg = functools.partial(_agg_kernel, tf=TF, fv_resident=fv_resident)
    out_p = pl.pallas_call(
        agg,
        out_shape=jax.ShapeDtypeStruct((E_P, OUT_P), jnp.float32),
        grid=(E_P // TE, F_P // TF),
        in_specs=[
            pl.BlockSpec((TE, TF), lambda i, k: (i, k)),
            fv_spec,
        ],
        out_specs=pl.BlockSpec((TE, OUT_P), lambda i, k: (i, 0)),
        compiler_params=pltpu.CompilerParams(
            dimension_semantics=("parallel", "arbitrary"),
            vmem_limit_bytes=vmem_limit,
        ),
        cost_estimate=pl.CostEstimate(
            flops=2 * E_P * F_P * OUT_P,
            transcendentals=0,
            bytes_accessed=E_P * F_P * 2 + fv_hbm_bytes + E_P * OUT_P * 4,
        ),
    )(scat, fact_val)

    out = out_p[:E, :out_features]
    return out.reshape(batch_size, max_local_entity, hidden_size)


# --------------------------------------------------------------------------
# Plain reference (numpy) reproducing the torch.sparse.mm path
# --------------------------------------------------------------------------
def _reference(local_entity, edge_list, rel_features, weight, bias):
    batch_heads, batch_rels, batch_tails, batch_ids, fact_ids, _ = edge_list
    batch_size, max_local_entity = local_entity.shape
    num_fact = len(fact_ids)
    E = batch_size * max_local_entity
    rel_np = np.asarray(rel_features, dtype=np.float32)
    w_np = np.asarray(weight, dtype=np.float32)
    b_np = np.asarray(bias, dtype=np.float32)
    fact_rel = rel_np[np.asarray(batch_rels)]
    fact_val = fact_rel @ w_np.T + b_np
    t_mat = np.zeros((E, num_fact), np.float32)
    np.add.at(t_mat, (np.asarray(batch_tails), np.asarray(fact_ids)), 1.0)
    h_mat = np.zeros((E, num_fact), np.float32)
    np.add.at(h_mat, (np.asarray(batch_heads), np.asarray(fact_ids)), 1.0)
    f2e = np.maximum(t_mat @ fact_val + h_mat @ fact_val, 0.0)
    return f2e.reshape(batch_size, max_local_entity, w_np.shape[0])


if __name__ == "__main__":
    # small, deterministic synthetic problem
    batch_size = 2
    max_local_entity = 16
    hidden = 32            # in_features == out_features (required by .view)
    num_relations = 8
    num_fact = 24

    key = jax.random.PRNGKey(0)
    k_rel, k_w, k_b = jax.random.split(key, 3)
    rel_features = jax.random.normal(k_rel, (num_relations, hidden), jnp.float32)
    bound = 1.0 / np.sqrt(hidden)
    weight = jax.random.uniform(k_w, (hidden, hidden), jnp.float32, -bound, bound)
    bias = jax.random.uniform(k_b, (hidden,), jnp.float32, -bound, bound)

    # deterministic edge lists (global entity indices, per-fact relation ids)
    rng = np.random.RandomState(0)
    batch_ids = rng.randint(0, batch_size, size=num_fact)
    batch_heads = (batch_ids * max_local_entity
                   + rng.randint(0, max_local_entity, size=num_fact)).tolist()
    batch_tails = (batch_ids * max_local_entity
                   + rng.randint(0, max_local_entity, size=num_fact)).tolist()
    batch_rels = rng.randint(0, num_relations, size=num_fact).tolist()
    fact_ids = list(range(num_fact))
    weight_list = [1.0] * num_fact
    edge_list = (batch_heads, batch_rels, batch_tails,
                 batch_ids.tolist(), fact_ids, weight_list)

    local_entity = jnp.zeros((batch_size, max_local_entity), jnp.int32)

    out = type_layer_forward(local_entity, edge_list, rel_features, weight, bias)
    out = jax.block_until_ready(out)

    ref = _reference(local_entity, edge_list, rel_features, weight, bias)
    # fact_val travels in bf16 through the aggregation matmul (~0.4% relative
    # precision); loosen tolerances accordingly.
    np.testing.assert_allclose(np.asarray(out), np.asarray(ref),
                               rtol=3e-2, atol=3e-2)
    assert out.shape == (batch_size, max_local_entity, hidden)
    assert not bool(jnp.isnan(out).any())
    print("KERNEL_OK")
</pallas_src>

<mosaic_0001>
module attributes {stable_mosaic.version = 11 : i64} {
  func.func @_linear_kernel(%arg0: i32, %arg1: memref<16x128xf32, #tpu.memory_space<vmem>>, %arg2: memref<128x128xf32, #tpu.memory_space<vmem>>, %arg3: memref<1x128xf32, #tpu.memory_space<vmem>>, %arg4: memref<16x128xbf16, #tpu.memory_space<vmem>>) attributes {dimension_semantics = [#tpu.dimension_semantics<parallel>], iteration_bounds = array<i64: 1>, scalar_prefetch = 0 : i64, scratch_operands = 0 : i64, tpu.core_type = #tpu.core_type<tc>, window_params = [{transform_indices = @transform_0, window_bounds = array<i64: 16, 128>}, {pipeline_mode = #tpu.pipeline_mode<synchronous>, transform_indices = @transform_1, window_bounds = array<i64: 128, 128>}, {pipeline_mode = #tpu.pipeline_mode<synchronous>, transform_indices = @transform_2, window_bounds = array<i64: 1, 128>}, {transform_indices = @transform_3, window_bounds = array<i64: 16, 128>}]} {
    %c0 = arith.constant 0 : index
    %c0_0 = arith.constant 0 : index
    %0 = vector.load %arg1[%c0, %c0_0] : memref<16x128xf32, #tpu.memory_space<vmem>>, vector<16x128xf32>
    %c0_1 = arith.constant 0 : index
    %c0_2 = arith.constant 0 : index
    %1 = vector.load %arg2[%c0_1, %c0_2] : memref<128x128xf32, #tpu.memory_space<vmem>>, vector<128x128xf32>
    %cst = arith.constant dense<0.000000e+00> : vector<16x128xf32>
    %2 = tpu.matmul %0, %1, %cst {dimension_numbers = #tpu.dot_dimension_numbers<[1], [0], [0], [1], [0, 0, 1, 1], [], []>} : vector<16x128xf32>, vector<128x128xf32>, vector<16x128xf32> -> vector<16x128xf32>
    %c0_3 = arith.constant 0 : index
    %c0_4 = arith.constant 0 : index
    %3 = vector.load %arg3[%c0_3, %c0_4] : memref<1x128xf32, #tpu.memory_space<vmem>>, vector<1x128xf32>
    %4 = vector.broadcast %3 : vector<1x128xf32> to vector<16x128xf32>
    %5 = arith.addf %2, %4 : vector<16x128xf32>
    %6 = arith.truncf %5 : vector<16x128xf32> to vector<16x128xbf16>
    %c0_5 = arith.constant 0 : index
    %c0_6 = arith.constant 0 : index
    %7 = vector.load %arg4[%c0_5, %c0_6] : memref<16x128xbf16, #tpu.memory_space<vmem>>, vector<16x128xbf16>
    tpu.vector_store %arg4[%c0_5, %c0_6], %6 {strides = array<i32>} : memref<16x128xbf16, #tpu.memory_space<vmem>>, vector<16x128xbf16>,
    return
  }
  func.func @transform_0(%arg0: i32) -> (i32, i32) {
    %c0_i32 = arith.constant 0 : i32
    %c0_i32_0 = arith.constant 0 : i32
    return %arg0, %c0_i32 : i32, i32
  }
  func.func @transform_1(%arg0: i32) -> (i32, i32) {
    %c0_i32 = arith.constant 0 : i32
    %c0_i32_0 = arith.constant 0 : i32
    %c0_i32_1 = arith.constant 0 : i32
    return %c0_i32, %c0_i32_0 : i32, i32
  }
  func.func @transform_2(%arg0: i32) -> (i32, i32) {
    %c0_i32 = arith.constant 0 : i32
    %c0_i32_0 = arith.constant 0 : i32
    %c0_i32_1 = arith.constant 0 : i32
    return %c0_i32, %c0_i32_0 : i32, i32
  }
  func.func @transform_3(%arg0: i32) -> (i32, i32) {
    %c0_i32 = arith.constant 0 : i32
    %c0_i32_0 = arith.constant 0 : i32
    return %arg0, %c0_i32 : i32, i32
  }
}

</mosaic_0001>

<bundles_post_ra>
// kernel: tpu_custom_call.1
= control target key start
LH: loop header
LB: loop body
LE: loop exit
PB: predicated region body
PF: predicated region fallthrough
CT: control target
= control target key end

     0   :  { %8 = vsyncpa [#allocation3], 0  ;;  %s346_s0 = inlined_call_operand.hbm [shape: f32[16,128], index: 0, kind: input, shape index: {}]   ;;  %s347_s1 = inlined_call_operand.hbm [shape: f32[128,128], index: 1, kind: input, shape index: {}]   ;;  %s348_s2 = inlined_call_operand.vmem [shape: f32[1,128], index: 2, kind: input, shape index: {}]   ;;  %s349_s3 = inlined_call_operand.hbm [shape: bf16[16,128], index: 3, kind: output, shape index: {}]  }
   0x1   :  { %9 = vsyncpa [#allocation6], 0 }
   0x2   :  { %10 = vsyncpa [#allocation4], 0  ;;  %s307_s12 = smov [#allocation2]  }
   0x3   :  { %s16_s13 = sshll.u32 %s307_s12, 4  ;;  %s17_s13 = int_to_ptr.vmem [resolvable:$true] %s16_s13 }
   0x4   :  { %s249_s14 = scalar_lea.vmem %s17_s13, 256  ;;  %p254_p1 = scmp.lt.s32.totalorder %s17_s13, %s17_s13 }
   0x5   :  { %p250_p0 = scmp.ne.s32.totalorder %s17_s13, %s249_s14  ;;  %p255_p2 = scmp.lt.s32.totalorder %s249_s14, %s249_s14 }
   0x7   :  { %p256_p3 = por %p255_p2, %p254_p1 }
   0x9   :  { %p257_p4 = pnand %p256_p3, %p250_p0 }
   0xb   :  { %260 = shalt.err (!%p257_p4)
}
   0xc   :  { %s308_s15 = smov 128   ;;  %s309_s16 = smov 8  }
   0xd   :  { %22 = dma.hbm_to_vmem [thread:$0]  %s346_s0, 256, %s17_s13, [#allocation3], %s308_s15, %s308_s15, %s309_s16  }
   0xe   :  { %s310_s19 = smov [#allocation5]  }
   0xf   :  { %s28_s20 = sshll.u32 %s310_s19, 4  ;;  %s29_s20 = int_to_ptr.vmem [resolvable:$true] %s28_s20 }
  0x10   :  { %s269_s21 = scalar_lea.vmem %s29_s20, 2048  ;;  %p274_p6 = scmp.lt.s32.totalorder %s29_s20, %s29_s20 }
  0x11   :  { %p270_p5 = scmp.ne.s32.totalorder %s29_s20, %s269_s21  ;;  %p275_p7 = scmp.lt.s32.totalorder %s269_s21, %s269_s21 }
  0x13   :  { %p276_p8 = por %p275_p7, %p274_p6 }
  0x15   :  { %p277_p9 = pnand %p276_p8, %p270_p5 }
  0x17   :  { %280 = shalt.err (!%p277_p9)
}
  0x18   :  { %34 = dma.hbm_to_vmem [thread:$0]  %s347_s1, 2048, %s29_s20, [#allocation6], %s308_s15, %s308_s15, %s309_s16  }
  0x19   :  { %301 = dma.done.wait [#allocation3], 256  }
  0x1a   :  { %302 = vsyncadd [#allocation3], 4294967040 }
  0x1b   :  { %303 = dma.done.wait [#allocation6], 2048  }
  0x1c   :  { %304 = vsyncadd [#allocation6], 4294965248  ;;  %v60_v0 = vld [vmem:[#allocation5 + $0x78] sm:$0xff]  ;;  %v59_v1 = vld [vmem:[#allocation5 + $0x70] sm:$0xff]  ;;  %s311_s24 = smov [#allocation7]  }
  0x1d   :  { %199 = vmatprep.subr.mxu0 %v60_v0  ;;  %v58_v2 = vld [vmem:[#allocation5 + $0x68] sm:$0xff]  ;;  %v57_v3 = vld [vmem:[#allocation5 + $0x60] sm:$0xff]  ;;  %v43_v4 = vld [vmem:[#allocation2] sm:$0xff]  ;;  %s158_s25 = sshll.u32 %s311_s24, 4  ;;  %s159_s25 = int_to_ptr.vmem [resolvable:$true] %s158_s25 }
  0x1e   :  { %200 = vmatpush3.msra.mxu0 %v60_v0  ;;  %v56_v5 = vld [vmem:[#allocation5 + $0x58] sm:$0xff]  ;;  %231 = vmatprep.mubr.f32.mxu0 %v43_v4  ;;  %v55_v6 = vld [vmem:[#allocation5 + $0x50] sm:$0xff]  ;;  %v54_v7 = vld [vmem:[#allocation5 + $0x48] sm:$0xff]  ;;  %s281_s26 = scalar_lea.vmem %s159_s25, 128  ;;  %p286_p11 = scmp.lt.s32.totalorder %s159_s25, %s159_s25 }
  0x1f   :  { %201 = vmatprep.subr.mxu0 %v59_v1  ;;  %v53_v8 = vld [vmem:[#allocation5 + $0x40] sm:$0xff]  ;;  %v52_v9 = vld [vmem:[#allocation5 + $0x38] sm:$0xff]  ;;  %v51_v10 = vld [vmem:[#allocation5 + $0x30] sm:$0xff]  ;;  %p282_p10 = scmp.ne.s32.totalorder %s159_s25, %s281_s26  ;;  %p287_p12 = scmp.lt.s32.totalorder %s281_s26, %s281_s26 }
  0x20   :  { %202 = vmatpush3.msra.mxu0 %v59_v1  ;;  %v50_v11 = vld [vmem:[#allocation5 + $0x28] sm:$0xff]  ;;  %v49_v12 = vld [vmem:[#allocation5 + $0x20] sm:$0xff]  ;;  %v48_v13 = vld [vmem:[#allocation5 + $0x18] sm:$0xff] }
  0x21   :  { %203 = vmatprep.subr.mxu0 %v58_v2  ;;  %v47_v14 = vld [vmem:[#allocation5 + $0x10] sm:$0xff]  ;;  %v46_v15 = vld [vmem:[#allocation5 + $0x8] sm:$0xff]  ;;  %v45_v16 = vld [vmem:[#allocation5] sm:$0xff]  ;;  %p288_p13 = por %p287_p12, %p286_p11 }
  0x22   :  { %204 = vmatpush3.msra.mxu0 %v58_v2  ;;  %v44_v17 = vld [vmem:[#allocation2 + $0x8] sm:$0xff]  ;;  %v171_v19 = vld [vmem:[%s348_s2] ss:$0 sm:$0xff] }
  0x23   :  { %205 = vmatprep.subr.mxu0 %v57_v3  ;;  %p289_p0 = pnand %p288_p13, %p282_p10 }
  0x24   :  { %206 = vmatpush3.msra.mxu0 %v57_v3 }
  0x25   :  { %207 = vmatprep.subr.mxu0 %v56_v5 }
  0x26   :  { %208 = vmatpush3.msra.mxu0 %v56_v5 }
  0x27   :  { %209 = vmatprep.subr.mxu0 %v55_v6 }
  0x28   :  { %210 = vmatpush3.msra.mxu0 %v55_v6 }
  0x29   :  { %211 = vmatprep.subr.mxu0 %v54_v7 }
  0x2a   :  { %212 = vmatpush3.msra.mxu0 %v54_v7 }
  0x2b   :  { %213 = vmatprep.subr.mxu0 %v53_v8 }
  0x2c   :  { %214 = vmatpush3.msra.mxu0 %v53_v8 }
  0x2d   :  { %215 = vmatprep.subr.mxu0 %v52_v9 }
  0x2e   :  { %216 = vmatpush3.msra.mxu0 %v52_v9 }
  0x2f   :  { %217 = vmatprep.subr.mxu0 %v51_v10 }
  0x30   :  { %218 = vmatpush3.msra.mxu0 %v51_v10 }
  0x31   :  { %219 = vmatprep.subr.mxu0 %v50_v11 }
  0x32   :  { %220 = vmatpush3.msra.mxu0 %v50_v11 }
  0x33   :  { %221 = vmatprep.subr.mxu0 %v49_v12 }
  0x34   :  { %222 = vmatpush3.msra.mxu0 %v49_v12 }
  0x35   :  { %223 = vmatprep.subr.mxu0 %v48_v13 }
  0x36   :  { %224 = vmatpush3.msra.mxu0 %v48_v13 }
  0x37   :  { %225 = vmatprep.subr.mxu0 %v47_v14 }
  0x38   :  { %226 = vmatpush3.msra.mxu0 %v47_v14 }
  0x39   :  { %227 = vmatprep.subr.mxu0 %v46_v15 }
  0x3a   :  { %228 = vmatpush3.msra.mxu0 %v46_v15 }
  0x3b   :  { %229 = vmatprep.subr.mxu0 %v45_v16 }
  0x3c   :  { %230 = vmatpush3.msra.mxu0 %v45_v16 }
  0x3d   :  { %232 = vmatmul.mubr.f32.vlgmr.msra.gmra.mxu0 %v44_v17 }
  0xfd   :  { %v233_v18 = vpop.f32.mrf.mxu0 }
  0xfe   :  { %v140_v21 = vadd.f32 %v233_v18, %v171_v19 }
  0xff   :  { %v134_v20 = vpop.f32.mrf.mxu0 }
 0x100   :  { %v135_v22 = vadd.f32 %v171_v19, %v134_v20 }
 0x102   :  { %v179_v23 = vpack.c.bf16 %v140_v21, %v135_v22 }
 0x104   :  { %180 = vst [vmem:[#allocation7] sm:$0xff] %v179_v23  }
 0x105   :  { %292 = shalt.err (!%p289_p0)
}
 0x106   :  { %s312_s27 = smov 64   ;;  %s313_s28 = smov 4  }
 0x107   :  { %164 = dma.vmem_to_hbm [thread:$0]  %s159_s25, 128, %s349_s3, [#allocation4], %s312_s27, %s312_s27, %s313_s28  }
 0x108   :  { %305 = dma.done.wait [#allocation4], 128  }
 0x109   :  { %306 = vsyncadd [#allocation4], 4294967168 }
 0x10a   :  { %168 = vsyncpa [#allocation3], 1 }
 0x10b   :  { %169 = vsyncpa [#allocation6], 1 }
 0x10c   :  { %170 = vsyncpa [#allocation4], 1 }

</bundles_post_ra>
